<compile_context>
chip_gen: v7x
topology: tpu7x:2x2x1
jax: 0.10.0
libtpu: 0.0.40
codegen_flags: <defaults>
</compile_context>

<pallas_src>
import functools

import jax
import jax.numpy as jnp
from jax.experimental import pallas as pl
from jax.experimental.pallas import tpu as pltpu

_LANES = 128


def _dice_partial_kernel(pred_ref, tgt_ref, out_ref, *, rows, sub_tile, need_mask):
    """Per-tile partial sums: out[k] = [sum(p*t), sum(p), sum(t)] per batch row."""
    p = pred_ref[...].astype(jnp.float32)
    t = tgt_ref[...].astype(jnp.float32)

    if need_mask:
        # The last tile along the row axis may run past `rows`; zero the overflow
        # (out-of-bounds block contents are unspecified, zeros are sum-neutral).
        k = pl.program_id(0)
        row_ids = jax.lax.broadcasted_iota(jnp.int32, p.shape, 1) + k * sub_tile
        valid = row_ids < rows
        zero = jnp.float32(0.0)
        p = jnp.where(valid, p, zero)
        t = jnp.where(valid, t, zero)

    def _sum_bt(x):  # (B, sub_tile, 128) -> (B,)
        return jnp.sum(jnp.sum(x, axis=2), axis=1)

    out_ref[0, 0, :] = _sum_bt(p * t)
    out_ref[0, 1, :] = _sum_bt(p)
    out_ref[0, 2, :] = _sum_bt(t)


def _pick_sub_tile(rows, batch, in_itemsize, vmem_budget_bytes=8 * 1024 * 1024):
    """Rows per tile: biggest multiple of 8 fitting the double-buffered budget."""
    per_row_bytes = 2 * batch * _LANES * max(in_itemsize, 1)  # 2 = pipeline bufs
    max_rows = max(vmem_budget_bytes // per_row_bytes, 8)
    if rows <= max_rows:
        return rows  # full row extent is always a legal block dim
    return int(max((max_rows // 8) * 8, 8))


@jax.jit
def dice_loss(pred, target, weight=None):
    smooth = jnp.float32(1.0)
    b = pred.shape[0]
    pred_flat = pred.reshape(b, -1)
    target_flat = target.reshape(b, -1)
    n = pred_flat.shape[1]

    # Lane-pad only in the (rare) case N is not a multiple of 128; zeros are
    # neutral for all three sums.
    # TODO(synk): a 2-D fallback layout could avoid this copy entirely.
    n_lane = ((n + _LANES - 1) // _LANES) * _LANES
    if n_lane != n:
        pad = ((0, 0), (0, n_lane - n))
        pred_flat = jnp.pad(pred_flat, pad)
        target_flat = jnp.pad(target_flat, pad)

    rows = n_lane // _LANES
    pred3 = pred_flat.reshape(b, rows, _LANES)
    tgt3 = target_flat.reshape(b, rows, _LANES)

    in_itemsize = pred3.dtype.itemsize + tgt3.dtype.itemsize
    sub_tile = _pick_sub_tile(rows, b, in_itemsize)
    n_tiles = (rows + sub_tile - 1) // sub_tile
    need_mask = (rows % sub_tile) != 0

    kernel = functools.partial(
        _dice_partial_kernel, rows=rows, sub_tile=sub_tile, need_mask=need_mask
    )

    cost = pl.CostEstimate(
        flops=4 * b * rows * _LANES,
        transcendentals=0,
        bytes_accessed=b * rows * _LANES * in_itemsize + n_tiles * 3 * b * 4,
    )

    partial_sums = pl.pallas_call(
        kernel,
        out_shape=jax.ShapeDtypeStruct((n_tiles, 3, b), jnp.float32),
        grid=(n_tiles,),
        in_specs=[
            pl.BlockSpec((b, sub_tile, _LANES), lambda k: (0, k, 0)),
            pl.BlockSpec((b, sub_tile, _LANES), lambda k: (0, k, 0)),
        ],
        out_specs=pl.BlockSpec((1, 3, b), lambda k: (k, 0, 0)),
        compiler_params=pltpu.CompilerParams(dimension_semantics=("parallel",)),
        cost_estimate=cost,
    )(pred3, tgt3)

    sums = jnp.sum(partial_sums, axis=0)  # (3, B)
    inter, psum, tsum = sums[0], sums[1], sums[2]
    dice_score = (2.0 * inter + smooth) / (psum + tsum + smooth)
    if weight is not None:
        dice_score = weight * dice_score
        return jnp.sum(weight) / b - jnp.sum(dice_score) / b
    return jnp.float32(1.0) - jnp.sum(dice_score) / b


def dice_loss_ref(pred, target, weight=None):
    smooth = 1.0
    b = pred.shape[0]
    p = pred.reshape(b, -1).astype(jnp.float32)
    t = target.reshape(b, -1).astype(jnp.float32)
    inter = jnp.sum(p * t, axis=1)
    score = (2.0 * inter + smooth) / (jnp.sum(p, axis=1) + jnp.sum(t, axis=1) + smooth)
    if weight is not None:
        score = weight * score
        return jnp.sum(weight) / b - jnp.sum(score) / b
    return 1.0 - jnp.sum(score) / b


if __name__ == "__main__":
    key = jax.random.PRNGKey(0)
    k1, k2, k3 = jax.random.split(key, 3)
    B, C, H, W = 2, 4, 16, 16  # NCHW, matching PyTorch conventions
    pred = jax.nn.sigmoid(jax.random.normal(k1, (B, C, H, W), dtype=jnp.float32))
    target = (jax.random.uniform(k2, (B, C, H, W)) > 0.5).astype(jnp.float32)

    # weight=None path (default PyTorch forward).
    loss = dice_loss(pred, target)
    jax.block_until_ready(loss)
    ref = dice_loss_ref(pred, target)
    assert jnp.allclose(loss, ref, atol=1e-5, rtol=1e-5), (loss, ref)

    # Optional per-batch `weight` path.
    weight = jax.random.uniform(k3, (B,), dtype=jnp.float32)
    loss_w = dice_loss(pred, target, weight)
    jax.block_until_ready(loss_w)
    ref_w = dice_loss_ref(pred, target, weight)
    assert jnp.allclose(loss_w, ref_w, atol=1e-5, rtol=1e-5), (loss_w, ref_w)

    print("KERNEL_OK")
</pallas_src>

<mosaic_0001>
module attributes {stable_mosaic.version = 11 : i64} {
  func.func @_dice_partial_kernel(%arg0: i32, %arg1: memref<2x8x128xf32, #tpu.memory_space<vmem>>, %arg2: memref<2x8x128xf32, #tpu.memory_space<vmem>>, %arg3: memref<1x3x2xf32, #tpu.memory_space<vmem>>) attributes {dimension_semantics = [#tpu.dimension_semantics<parallel>], iteration_bounds = array<i64: 1>, scalar_prefetch = 0 : i64, scratch_operands = 0 : i64, tpu.core_type = #tpu.core_type<tc>, window_params = [{transform_indices = @transform_0, window_bounds = array<i64: 2, 8, 128>}, {transform_indices = @transform_1, window_bounds = array<i64: 2, 8, 128>}, {transform_indices = @transform_2, window_bounds = array<i64: 1, 3, 2>}]} {
    %c0 = arith.constant 0 : index
    %c0_0 = arith.constant 0 : index
    %c0_1 = arith.constant 0 : index
    %0 = vector.load %arg1[%c0, %c0_0, %c0_1] : memref<2x8x128xf32, #tpu.memory_space<vmem>>, vector<2x8x128xf32>
    %c0_2 = arith.constant 0 : index
    %c0_3 = arith.constant 0 : index
    %c0_4 = arith.constant 0 : index
    %1 = vector.load %arg2[%c0_2, %c0_3, %c0_4] : memref<2x8x128xf32, #tpu.memory_space<vmem>>, vector<2x8x128xf32>
    %2 = arith.mulf %0, %1 : vector<2x8x128xf32>
    %cst = arith.constant dense<0.000000e+00> : vector<2x8xf32>
    %3 = vector.multi_reduction <add>, %2, %cst [2] : vector<2x8x128xf32> to vector<2x8xf32>
    %cst_5 = arith.constant dense<0.000000e+00> : vector<2xf32>
    %4 = vector.multi_reduction <add>, %3, %cst_5 [1] : vector<2x8xf32> to vector<2xf32>
    %c0_6 = arith.constant 0 : index
    %c0_7 = arith.constant 0 : index
    %c0_8 = arith.constant 0 : index
    %5 = vector.load %arg3[%c0_6, %c0_7, %c0_8] : memref<1x3x2xf32, #tpu.memory_space<vmem>>, vector<1x1x2xf32>
    %6 = vector.shape_cast %5 : vector<1x1x2xf32> to vector<2xf32>
    %7 = vector.shape_cast %4 : vector<2xf32> to vector<1x1x2xf32>
    tpu.vector_store %arg3[%c0_6, %c0_7, %c0_8], %7 {strides = array<i32>} : memref<1x3x2xf32, #tpu.memory_space<vmem>>, vector<1x1x2xf32>,
    %cst_9 = arith.constant dense<0.000000e+00> : vector<2x8xf32>
    %8 = vector.multi_reduction <add>, %0, %cst_9 [2] : vector<2x8x128xf32> to vector<2x8xf32>
    %cst_10 = arith.constant dense<0.000000e+00> : vector<2xf32>
    %9 = vector.multi_reduction <add>, %8, %cst_10 [1] : vector<2x8xf32> to vector<2xf32>
    %c0_11 = arith.constant 0 : index
    %c1 = arith.constant 1 : index
    %c0_12 = arith.constant 0 : index
    %10 = vector.load %arg3[%c0_11, %c1, %c0_12] : memref<1x3x2xf32, #tpu.memory_space<vmem>>, vector<1x1x2xf32>
    %11 = vector.shape_cast %10 : vector<1x1x2xf32> to vector<2xf32>
    %12 = vector.shape_cast %9 : vector<2xf32> to vector<1x1x2xf32>
    tpu.vector_store %arg3[%c0_11, %c1, %c0_12], %12 {strides = array<i32>} : memref<1x3x2xf32, #tpu.memory_space<vmem>>, vector<1x1x2xf32>,
    %cst_13 = arith.constant dense<0.000000e+00> : vector<2x8xf32>
    %13 = vector.multi_reduction <add>, %1, %cst_13 [2] : vector<2x8x128xf32> to vector<2x8xf32>
    %cst_14 = arith.constant dense<0.000000e+00> : vector<2xf32>
    %14 = vector.multi_reduction <add>, %13, %cst_14 [1] : vector<2x8xf32> to vector<2xf32>
    %c0_15 = arith.constant 0 : index
    %c2 = arith.constant 2 : index
    %c0_16 = arith.constant 0 : index
    %15 = vector.load %arg3[%c0_15, %c2, %c0_16] : memref<1x3x2xf32, #tpu.memory_space<vmem>>, vector<1x1x2xf32>
    %16 = vector.shape_cast %15 : vector<1x1x2xf32> to vector<2xf32>
    %17 = vector.shape_cast %14 : vector<2xf32> to vector<1x1x2xf32>
    tpu.vector_store %arg3[%c0_15, %c2, %c0_16], %17 {strides = array<i32>} : memref<1x3x2xf32, #tpu.memory_space<vmem>>, vector<1x1x2xf32>,
    return
  }
  func.func @transform_0(%arg0: i32) -> (i32, i32, i32) {
    %c0_i32 = arith.constant 0 : i32
    %c0_i32_0 = arith.constant 0 : i32
    %c0_i32_1 = arith.constant 0 : i32
    return %c0_i32, %arg0, %c0_i32_0 : i32, i32, i32
  }
  func.func @transform_1(%arg0: i32) -> (i32, i32, i32) {
    %c0_i32 = arith.constant 0 : i32
    %c0_i32_0 = arith.constant 0 : i32
    %c0_i32_1 = arith.constant 0 : i32
    return %c0_i32, %arg0, %c0_i32_0 : i32, i32, i32
  }
  func.func @transform_2(%arg0: i32) -> (i32, i32, i32) {
    %c0_i32 = arith.constant 0 : i32
    %c0_i32_0 = arith.constant 0 : i32
    %c0_i32_1 = arith.constant 0 : i32
    return %arg0, %c0_i32, %c0_i32_0 : i32, i32, i32
  }
}

</mosaic_0001>

<bundles_post_ra>
// kernel: dice_loss.1
= control target key start
LH: loop header
LB: loop body
LE: loop exit
PB: predicated region body
PF: predicated region fallthrough
CT: control target
= control target key end

     0   :  { %v23_v6 = vlaneseq  ;;  %vm33_vm0 = vcmask 1041409   ;;  %vm36_vm1 = vcmask 58368   ;;  %vm46_vm2 = vcmask 8192   ;;  %s143_s0 = inlined_call_operand.vmem [shape: f32[2,8,128], index: 0, kind: input, shape index: {}]   ;;  %s144_s1 = inlined_call_operand.vmem [shape: f32[2,8,128], index: 1, kind: input, shape index: {}]   ;;  %s145_s2 = inlined_call_operand.vmem [shape: f32[1,3,2], index: 2, kind: output, shape index: {}]  }
   0x1   :  { %v11_v0 = vld [vmem:[%s143_s0] sm:$0xff]  ;;  %v12_v2 = vld [vmem:[%s143_s0 + $0x8] sm:$0xff] }
   0x2   :  { %v13_v1 = vld [vmem:[%s144_s1] sm:$0xff]  ;;  %48 = vadd.xlane.f32.xlu1 %v11_v0  ;;  %v14_v4 = vld [vmem:[%s144_s1 + $0x8] sm:$0xff]  ;;  %v24_v7 = vand.u32 127, %v23_v6  ;;  %v26_v8 = vshrl.u32 %v23_v6, 7 }
   0x3   :  { %v15_v3 = vmul.f32 %v13_v1, %v11_v0  ;;  %v16_v5 = vmul.f32 %v14_v4, %v12_v2 }
   0x4   :  { %v27_v10 = vsub.s32 %v24_v7, %v26_v8 }
   0x5   :  { %17 = vadd.xlane.f32.xlu0 %v15_v3 }
   0x6   :  { %50 = vadd.xlane.f32.xlu1 %v12_v2 }
   0x9   :  { %19 = vadd.xlane.f32.xlu0 %v16_v5 }
   0xa   :  { %76 = vadd.xlane.f32.xlu1 %v14_v4 }
   0xd   :  { %74 = vadd.xlane.f32.xlu0 %v13_v1 }
  0x8f   :  { %v49_v9 = vpop.xlane.xlu1 %48 }
  0x90   :  { %v57_v13 = vrot.slane %v49_v9, %v27_v10 }
  0x92   :  { %v18_v11 = vpop.xlane.xlu0 %17 }
  0x93   :  { %v51_v12 = vpop.xlane.xlu1 %50  ;;  %v28_v16 = vrot.slane %v18_v11, %v27_v10 }
  0x94   :  { %v61_v14 = vrot.slane %v51_v12, %v27_v10 }
  0x96   :  { %v20_v15 = vpop.xlane.xlu0 %19  ;;  %v62_v18 = vsel %vm33_vm0, %v61_v14, %v57_v13 }
  0x97   :  { %v32_v17 = vrot.slane %v20_v15, %v27_v10  ;;  %v64_v19 = vsel %vm36_vm1, %v62_v18, 0.0  ;;  %v77_v20 = vpop.xlane.xlu1 %76 }
  0x98   :  { %65 = vadd.xlane.f32.xlu1 %v64_v19  ;;  %v87_v21 = vrot.slane %v77_v20, %v27_v10 }
  0x99   :  { %v34_v22 = vsel %vm33_vm0, %v32_v17, %v28_v16 }
  0x9a   :  { %v75_v23 = vpop.xlane.xlu0 %74  ;;  %v37_v24 = vsel %vm36_vm1, %v34_v22, 0.0 }
  0x9b   :  { %v83_v25 = vrot.slane %v75_v23, %v27_v10  ;;  %38 = vadd.xlane.f32.xlu0 %v37_v24 }
  0x9d   :  { %v88_v26 = vsel %vm33_vm0, %v87_v21, %v83_v25 }
  0x9e   :  { %v90_v27 = vsel %vm36_vm1, %v88_v26, 0.0 }
  0x9f   :  { %91 = vadd.xlane.f32.xlu0 %v90_v27 }
 0x125   :  { %v66_v28 = vpop.xlane.xlu1 %65 }
 0x126   :  { %v71_v29 = vrot.slane %v66_v28, %v27_v10 }
 0x128   :  { %v39_v30 = vpop.xlane.xlu0 %38  ;;  %73 = vst.msk [vmem:[%s145_s2 + $0x1] sm:$0x1] %vm46_vm2, %v71_v29 }
 0x129   :  { %v44_v31 = vrot.slane %v39_v30, %v27_v10 }
 0x12b   :  { %47 = vst.msk [vmem:[%s145_s2] sm:$0x1] %vm46_vm2, %v44_v31 }
 0x12c   :  { %v92_v32 = vpop.xlane.xlu0 %91 }
 0x12d   :  { %v97_v33 = vrot.slane %v92_v32, %v27_v10 }
 0x12f   :  { %99 = vst.msk [vmem:[%s145_s2 + $0x2] sm:$0x1] %vm46_vm2, %v97_v33 }

</bundles_post_ra>
